<compile_context>
chip_gen: v6e
topology: v6e:2x2x1
jax: 0.10.0
libtpu: 0.0.40
codegen_flags: <defaults>
</compile_context>

<pallas_src>
import functools

import jax
import jax.numpy as jnp
from jax.experimental import pallas as pl
from jax.experimental.pallas import tpu as pltpu

# TODO(synk): torch.nn.functional.view does not exist; semantics implemented
# as inputData.view(self.newShape) (standard contiguous reshape).

_LANES = 128
_TARGET_TILE_BYTES = 2 * 1024 * 1024  # ~2 MiB per block (review: 1-4 MiB sweet spot)


def _copy_kernel(x_ref, o_ref):
    # Pure element-stream copy of the current (tile_rows, 128) block.
    o_ref[...] = x_ref[...]


def _round_up(n: int, m: int) -> int:
    return ((n + m - 1) // m) * m


def _pallas_copy_2d(flat2d: jax.Array) -> jax.Array:
    """Large-tile identity copy of a (rows, 128) slab through VMEM."""
    rows, lanes = flat2d.shape
    itemsize = flat2d.dtype.itemsize
    # Dtype-aware sublane packing: 8 for f32, 16 for bf16, 32 for int8/fp8,
    # so every block is a whole number of packed vregs (unmasked vst).
    sub = max(8, 32 // itemsize)
    target_rows = max(sub, (_TARGET_TILE_BYTES // (lanes * itemsize)) // sub * sub)
    tile_rows = min(target_rows, _round_up(rows, sub))
    grid = (pl.cdiv(rows, tile_rows),)  # ragged last block masked by Pallas

    return pl.pallas_call(
        _copy_kernel,
        out_shape=jax.ShapeDtypeStruct((rows, lanes), flat2d.dtype),
        grid_spec=pltpu.PrefetchScalarGridSpec(
            num_scalar_prefetch=0,
            grid=grid,
            in_specs=[pl.BlockSpec((tile_rows, lanes), lambda i: (i, 0))],
            out_specs=pl.BlockSpec((tile_rows, lanes), lambda i: (i, 0)),
        ),
        compiler_params=pltpu.CompilerParams(
            dimension_semantics=("parallel",),
        ),
        cost_estimate=pl.CostEstimate(
            flops=0,
            transcendentals=0,
            bytes_accessed=2 * rows * lanes * itemsize,
        ),
    )(flat2d)


def _pallas_copy_full(flat: jax.Array) -> jax.Array:
    """Single whole-array block copy (only for sizes not divisible by 128)."""
    # TODO(synk): for very large inputs whose element count is not a multiple
    # of 128 this single-block path could exceed VMEM; such sizes do not arise
    # from the NCHW tensors this module reshapes.
    return pl.pallas_call(
        _copy_kernel,
        out_shape=jax.ShapeDtypeStruct(flat.shape, flat.dtype),
    )(flat)


@functools.partial(jax.jit, static_argnums=1)
def custom_reshape(x: jax.Array, new_shape) -> jax.Array:
    """Pallas-backed equivalent of x.view(new_shape) (contiguous, C-order)."""
    total = x.size
    new_shape = tuple(int(d) for d in new_shape)

    # Resolve a single -1 like torch .view, with explicit divisibility checks.
    if new_shape.count(-1) > 1:
        raise ValueError("view: only one dimension can be inferred (-1)")
    if -1 in new_shape:
        known = 1
        for d in new_shape:
            if d != -1:
                known *= d
        if known == 0 or total % known != 0:
            raise ValueError("view: shape is invalid for input size")
        new_shape = tuple(total // known if d == -1 else d for d in new_shape)
    prod = 1
    for d in new_shape:
        prod *= d
    if prod != total:
        raise ValueError("view: shape is invalid for input size")

    if total % _LANES == 0:
        # Metadata-only (bitcast under jit) reshape to a lane-dense 2-D slab.
        flat2d = x.reshape(total // _LANES, _LANES)
        out2d = _pallas_copy_2d(flat2d)
        return out2d.reshape(new_shape)
    else:
        flat = x.reshape(-1)
        out = _pallas_copy_full(flat)
        return out.reshape(new_shape)


if __name__ == "__main__":
    key = jax.random.PRNGKey(0)
    # NCHW input, small shapes: batch=2, channels=4, spatial=16x16.
    x = jax.random.normal(key, (2, 4, 16, 16), dtype=jnp.float32)

    new_shape = (2, -1)  # flatten per-sample, classic pre-FC reshape
    y = custom_reshape(x, new_shape)
    y = jax.block_until_ready(y)

    # Correctness check against plain reshape (== torch .view on contiguous).
    ref = x.reshape(2, -1)
    assert y.shape == (2, 4 * 16 * 16)
    assert y.dtype == x.dtype
    assert bool(jnp.array_equal(y, ref))

    print("KERNEL_OK")
</pallas_src>

<mosaic_0001>
module attributes {stable_mosaic.version = 11 : i64} {
  func.func @_copy_kernel(%arg0: i32, %arg1: memref<16x128xf32, #tpu.memory_space<vmem>>, %arg2: memref<16x128xf32, #tpu.memory_space<vmem>>) attributes {dimension_semantics = [#tpu.dimension_semantics<parallel>], iteration_bounds = array<i64: 1>, scalar_prefetch = 0 : i64, scratch_operands = 0 : i64, tpu.core_type = #tpu.core_type<tc>, window_params = [{transform_indices = @transform_0, window_bounds = array<i64: 16, 128>}, {transform_indices = @transform_1, window_bounds = array<i64: 16, 128>}]} {
    %c0 = arith.constant 0 : index
    %c0_0 = arith.constant 0 : index
    %0 = vector.load %arg1[%c0, %c0_0] : memref<16x128xf32, #tpu.memory_space<vmem>>, vector<16x128xf32>
    %c0_1 = arith.constant 0 : index
    %c0_2 = arith.constant 0 : index
    %1 = vector.load %arg2[%c0_1, %c0_2] : memref<16x128xf32, #tpu.memory_space<vmem>>, vector<16x128xf32>
    tpu.vector_store %arg2[%c0_1, %c0_2], %0 {strides = array<i32>} : memref<16x128xf32, #tpu.memory_space<vmem>>, vector<16x128xf32>,
    return
  }
  func.func @transform_0(%arg0: i32) -> (i32, i32) {
    %c0_i32 = arith.constant 0 : i32
    %c0_i32_0 = arith.constant 0 : i32
    return %arg0, %c0_i32 : i32, i32
  }
  func.func @transform_1(%arg0: i32) -> (i32, i32) {
    %c0_i32 = arith.constant 0 : i32
    %c0_i32_0 = arith.constant 0 : i32
    return %arg0, %c0_i32 : i32, i32
  }
}

</mosaic_0001>

<bundles_post_ra>
// kernel: custom_reshape.1
= control target key start
LH: loop header
LB: loop body
LE: loop exit
PB: predicated region body
PF: predicated region fallthrough
CT: control target
= control target key end

     0   :  { %s38_s0 = inlined_call_operand.vmem [shape: f32[16,128], index: 0, kind: input, shape index: {}]   ;;  %s39_s1 = inlined_call_operand.vmem [shape: f32[16,128], index: 1, kind: output, shape index: {}]  }
   0x1   :  { %v8_v0 = vld [vmem:[%s38_s0] sm:$0xff]  ;;  %v9_v1 = vld [vmem:[%s38_s0 + $0x8] sm:$0xff] }
   0x2   :  { %10 = vst [vmem:[%s39_s1] sm:$0xff] %v8_v0  ;;  %11 = vst [vmem:[%s39_s1 + $0x8] sm:$0xff] %v9_v1 }

</bundles_post_ra>
